<compile_context>
chip_gen: v6e
topology: v6e:2x2x1
jax: 0.10.0
libtpu: 0.0.40
codegen_flags: <defaults>
</compile_context>

<pallas_src>
import functools

import jax
import jax.numpy as jnp
from jax.experimental import pallas as pl
from jax.experimental.pallas import tpu as pltpu


def _round_up(x, m):
    return ((x + m - 1) // m) * m


# -----------------------------------------------------------------------------
# Pallas kernel: one (batch, time-tile) block of the TemporalBlock forward.
# -----------------------------------------------------------------------------
def _temporal_block_kernel(K, dil, pad, pad_a, TL, cdtype,
                           x_ref,       # (1, 1, 2*pad_a+TL, Cin_p) halo tile of x
                           w1_ref,      # (K, Cin_p, Cout_p)   conv1 weight per tap
                           w2_ref,      # (K, Cout_p, Cout_p)  conv2 weight per tap
                           wd_ref,      # (Cin_p, Cout_p)      downsample 1x1 weight
                           vec_ref,     # (8, Cout_p) f32: s1, t1, s2, t2, bd, 0, 0, 0
                           o_ref,       # (1, TL, Cout_p)
                           h1buf_ref):  # scratch (pad_a+TL, Cout_p) cdtype
    cout_p = o_ref.shape[2]
    TLH = pad_a + TL                    # h1 rows (halo + current tile)
    HX = 2 * pad_a                      # x halo rows
    st0 = pad_a - pad                   # static tap-0 offset

    # ---- conv1: K dilated causal taps (+ folded bias/BN1 + ReLU), halo incl. ----
    acc1 = jnp.dot(x_ref[0, 0, st0:st0 + TLH, :], w1_ref[0],
                   preferred_element_type=jnp.float32)
    for k in range(1, K):               # K small & static -> unrolled
        st = st0 + k * dil
        acc1 += jnp.dot(x_ref[0, 0, st:st + TLH, :], w1_ref[k],
                        preferred_element_type=jnp.float32)
    h1 = jnp.maximum(acc1 * vec_ref[0:1, :] + vec_ref[1:2, :], 0.0)
    h1c = h1.astype(cdtype)

    if K > 1:
        # Rows [TLH - floor8(dil), TLH) are only ever consumed from the
        # in-register copy (tap K-1) -> trim the scratch store.
        ns = TLH - (dil // 8) * 8
        h1buf_ref[0:ns, :] = h1c[0:ns, :]

        @pl.when(pl.program_id(1) == 0)
        def _():
            # Halo rows of time-tile 0 are t < 0: conv2's input is zero-padded
            # there.  (Store-then-zero relies on in-kernel program order.)
            h1buf_ref[0:pad_a, :] = jnp.zeros((pad_a, cout_p), cdtype)

    # ---- conv2: K dilated causal taps over h1 (+ folded bias/BN2 + ReLU) ----
    acc2 = jnp.dot(h1c[pad_a:pad_a + TL, :], w2_ref[K - 1],
                   preferred_element_type=jnp.float32)
    for k in range(K - 1):
        st = st0 + k * dil
        acc2 += jnp.dot(h1buf_ref[st:st + TL, :], w2_ref[k],
                        preferred_element_type=jnp.float32)
    out = jnp.maximum(acc2 * vec_ref[2:3, :] + vec_ref[3:4, :], 0.0)

    # ---- residual 1x1 downsample on the current-time rows of x ----
    res = jnp.dot(x_ref[0, 0, HX:HX + TL, :], wd_ref[...],
                  preferred_element_type=jnp.float32) + vec_ref[4:5, :]

    o_ref[0] = jnp.maximum(out + res, 0.0).astype(o_ref.dtype)


# -----------------------------------------------------------------------------
# Wrapper: layout plumbing (minimal channel padding, halo time tiling).
# -----------------------------------------------------------------------------
def temporal_block_pallas(x_ncl, params, *, kernel_size, dilation,
                          time_tile=512, compute_dtype=jnp.bfloat16,
                          out_dtype=None, nlc_output=False):
    """x_ncl: (N, C_in, L) float32 (PyTorch layout).

    Returns (N, C_out, L) by default, or (N, L, C_out) if nlc_output=True
    (channels-last, for feeding the next stacked block without a transpose).
    Output dtype defaults to compute_dtype.
    """
    N, Cin, L = x_ncl.shape
    K, dil = kernel_size, dilation
    pad = (K - 1) * dil
    Cout = params['w1'].shape[0]
    out_dt = compute_dtype if out_dtype is None else out_dtype

    Cin_p = _round_up(Cin, 16)          # minimal padding, NOT 128
    Cout_p = _round_up(Cout, 128)       # lane-dense output
    pad_a = _round_up(pad, 8) if pad > 0 else 0     # 8-aligned h1 halo
    HX = 2 * pad_a                                  # x halo (conv1 + conv2 history)

    # ---- choose the time tile TL (16-aligned; bf16-safe output blocks) ----
    TL = min(_round_up(time_tile, 16), _round_up(L, 16))
    if N == 1 and _round_up(L, 16) >= 32:
        # keep at least two time tiles so both v7x TensorCores get work
        TL = min(TL, _round_up(-(-L // 2), 16))
    TL = max(TL, _round_up(pad_a, 16), 16)

    csz = jnp.dtype(compute_dtype).itemsize
    osz = jnp.dtype(out_dt).itemsize

    def vmem_need(tl):
        lane = lambda c: _round_up(c, 128)          # VMEM lane padding
        xb = 2 * (HX + tl) * lane(Cin_p) * csz      # x block, double-buffered
        ob = 2 * tl * Cout_p * osz                  # output block, double-buffered
        wb = 2 * (K * Cin_p * Cout_p + K * Cout_p * Cout_p
                  + Cin_p * Cout_p) * csz + 2 * 8 * Cout_p * 4
        sc = (pad_a + tl) * Cout_p * csz            # h1 scratch
        return xb + ob + wb + sc

    budget = 26 * 1024 * 1024
    while vmem_need(TL) > budget:
        tl_new = max(_round_up(TL // 2, 16), _round_up(pad_a, 16), 16)
        if tl_new == TL:
            break
        TL = tl_new

    L_p = _round_up(L, TL)
    nT = L_p // TL

    # ---- fold conv bias + BatchNorm (eval) into per-channel scale / shift ----
    eps = 1e-5
    s1 = params['bn1_gamma'] / jnp.sqrt(params['bn1_var'] + eps)
    t1 = params['bn1_beta'] + (params['b1'] - params['bn1_mean']) * s1
    s2 = params['bn2_gamma'] / jnp.sqrt(params['bn2_var'] + eps)
    t2 = params['bn2_beta'] + (params['b2'] - params['bn2_mean']) * s2

    def pad_row(v):
        v = v.astype(jnp.float32)
        return jnp.pad(v, (0, Cout_p - v.shape[0]))

    zero_row = jnp.zeros((Cout_p,), jnp.float32)
    vecs = jnp.stack([pad_row(s1), pad_row(t1), pad_row(s2), pad_row(t2),
                      pad_row(params['bd']), zero_row, zero_row, zero_row],
                     axis=0)                                    # (8, Cout_p) f32

    # ---- kernel-friendly, channel-padded weight layouts ----
    w1 = jnp.transpose(params['w1'], (2, 1, 0))                 # (K, Cin, Cout)
    w1 = jnp.pad(w1, ((0, 0), (0, Cin_p - Cin),
                      (0, Cout_p - Cout))).astype(compute_dtype)
    w2 = jnp.transpose(params['w2'], (2, 1, 0))                 # (K, Cout, Cout)
    w2 = jnp.pad(w2, ((0, 0), (0, Cout_p - Cout),
                      (0, Cout_p - Cout))).astype(compute_dtype)
    wd = jnp.transpose(params['wd'][:, :, 0], (1, 0))           # (Cin, Cout)
    wd = jnp.pad(wd, ((0, Cin_p - Cin),
                      (0, Cout_p - Cout))).astype(compute_dtype)

    # ---- input: channels-last, minimal channel pad, overlapping halo tiles ----
    x_tlc = jnp.transpose(x_ncl, (0, 2, 1)).astype(jnp.float32)  # (N, L, Cin)
    x_tlc = jnp.pad(x_tlc, ((0, 0), (0, L_p - L), (0, Cin_p - Cin)))
    x_full = jnp.pad(x_tlc, ((0, 0), (HX, 0), (0, 0)))           # (N, HX+L_p, Cin_p)
    xt = jnp.stack([x_full[:, i * TL:i * TL + HX + TL, :] for i in range(nT)],
                   axis=1).astype(compute_dtype)                 # (N, nT, HX+TL, Cin_p)

    kernel = functools.partial(_temporal_block_kernel,
                               K, dil, pad, pad_a, TL, compute_dtype)

    vmem_limit = int(min(max(vmem_need(TL) * 3 // 2, 16 * 1024 * 1024),
                         48 * 1024 * 1024))

    out = pl.pallas_call(
        kernel,
        out_shape=jax.ShapeDtypeStruct((N, L_p, Cout_p), out_dt),
        grid_spec=pltpu.PrefetchScalarGridSpec(
            num_scalar_prefetch=0,
            grid=(N, nT),
            in_specs=[
                pl.BlockSpec((1, 1, HX + TL, Cin_p), lambda b, i: (b, i, 0, 0)),
                pl.BlockSpec((K, Cin_p, Cout_p), lambda b, i: (0, 0, 0)),
                pl.BlockSpec((K, Cout_p, Cout_p), lambda b, i: (0, 0, 0)),
                pl.BlockSpec((Cin_p, Cout_p), lambda b, i: (0, 0)),
                pl.BlockSpec((8, Cout_p), lambda b, i: (0, 0)),
            ],
            out_specs=pl.BlockSpec((1, TL, Cout_p), lambda b, i: (b, i, 0)),
            scratch_shapes=[pltpu.VMEM((pad_a + TL, Cout_p), compute_dtype)],
        ),
        compiler_params=pltpu.CompilerParams(
            dimension_semantics=("parallel", "parallel"),
            vmem_limit_bytes=vmem_limit),
    )(xt, w1, w2, wd, vecs)

    y = out[:, :L, :Cout]
    if nlc_output:
        return y                           # (N, L, Cout), channels-last
    return jnp.transpose(y, (0, 2, 1))     # PyTorch (N, Cout, L)


# -----------------------------------------------------------------------------
# Pure-JAX reference mirroring the PyTorch module exactly (eval mode).
# -----------------------------------------------------------------------------
def temporal_block_ref(x, params, *, kernel_size, dilation):
    pad = (kernel_size - 1) * dilation
    eps = 1e-5

    def conv1d(x, w, b, dil, padding):
        y = jax.lax.conv_general_dilated(
            x, w, window_strides=(1,), padding=[(padding, padding)],
            rhs_dilation=(dil,), dimension_numbers=('NCH', 'OIH', 'NCH'))
        return y + b[None, :, None]

    def bn(x, g, be, m, v):
        return (x - m[None, :, None]) / jnp.sqrt(v[None, :, None] + eps) \
            * g[None, :, None] + be[None, :, None]

    def chomp(x):          # symm_chomp=False
        return x[:, :, :-pad]

    h = conv1d(x, params['w1'], params['b1'], dilation, pad)
    h = bn(h, params['bn1_gamma'], params['bn1_beta'],
           params['bn1_mean'], params['bn1_var'])
    h = jax.nn.relu(chomp(h))
    h = conv1d(h, params['w2'], params['b2'], dilation, pad)
    h = bn(h, params['bn2_gamma'], params['bn2_beta'],
           params['bn2_mean'], params['bn2_var'])
    h = jax.nn.relu(chomp(h))
    res = conv1d(x, params['wd'], params['bd'], 1, 0)
    return jax.nn.relu(h + res)


# -----------------------------------------------------------------------------
if __name__ == "__main__":
    key = jax.random.PRNGKey(0)

    def make_params(k, Cin, Cout, K):
        ks = jax.random.split(k, 14)
        return {
            'w1': 0.1 * jax.random.normal(ks[0], (Cout, Cin, K), jnp.float32),
            'b1': 0.1 * jax.random.normal(ks[1], (Cout,), jnp.float32),
            'bn1_gamma': 1.0 + 0.1 * jax.random.normal(ks[2], (Cout,), jnp.float32),
            'bn1_beta': 0.1 * jax.random.normal(ks[3], (Cout,), jnp.float32),
            'bn1_mean': 0.05 * jax.random.normal(ks[4], (Cout,), jnp.float32),
            'bn1_var': jnp.abs(1.0 + 0.1 * jax.random.normal(ks[5], (Cout,), jnp.float32)),
            'w2': 0.1 * jax.random.normal(ks[6], (Cout, Cout, K), jnp.float32),
            'b2': 0.1 * jax.random.normal(ks[7], (Cout,), jnp.float32),
            'bn2_gamma': 1.0 + 0.1 * jax.random.normal(ks[8], (Cout,), jnp.float32),
            'bn2_beta': 0.1 * jax.random.normal(ks[9], (Cout,), jnp.float32),
            'bn2_mean': 0.05 * jax.random.normal(ks[10], (Cout,), jnp.float32),
            'bn2_var': jnp.abs(1.0 + 0.1 * jax.random.normal(ks[11], (Cout,), jnp.float32)),
            'wd': 0.1 * jax.random.normal(ks[12], (Cout, Cin, 1), jnp.float32),
            'bd': 0.1 * jax.random.normal(ks[13], (Cout,), jnp.float32),
        }

    # ---- config 1: first-layer-like (small Cin), batch 2, misaligned taps ----
    N, Cin, Cout, L, K, dil = 2, 8, 16, 16, 3, 2
    p1 = make_params(jax.random.fold_in(key, 1), Cin, Cout, K)
    x1 = jax.random.normal(jax.random.fold_in(key, 2), (N, Cin, L), jnp.float32)
    y_ref1 = temporal_block_ref(x1, p1, kernel_size=K, dilation=dil)

    # strict check on the f32 compute path
    y32 = jax.block_until_ready(
        temporal_block_pallas(x1, p1, kernel_size=K, dilation=dil,
                              compute_dtype=jnp.float32))
    assert y32.shape == (N, Cout, L)
    assert jnp.allclose(y32, y_ref1, rtol=1e-4, atol=1e-4), \
        f"cfg1 f32 max err {jnp.max(jnp.abs(y32 - y_ref1))}"

    # default bf16 MXU path (bf16 output), loose check
    ybf = jax.block_until_ready(
        temporal_block_pallas(x1, p1, kernel_size=K, dilation=dil))
    assert ybf.shape == (N, Cout, L)
    err = jnp.max(jnp.abs(ybf.astype(jnp.float32) - y_ref1))
    assert jnp.allclose(ybf.astype(jnp.float32), y_ref1, rtol=1e-1, atol=1e-1), \
        f"cfg1 bf16 max err {err}"

    # channels-last output path (what stacked blocks would consume)
    ynlc = jax.block_until_ready(
        temporal_block_pallas(x1, p1, kernel_size=K, dilation=dil,
                              nlc_output=True))
    assert ynlc.shape == (N, L, Cout)
    assert jnp.allclose(jnp.transpose(ynlc, (0, 2, 1)).astype(jnp.float32),
                        ybf.astype(jnp.float32))

    # ---- config 2: deeper-layer-like: N=1 -> two time tiles, channel padding,
    #      dilation 8 -> trimmed h1 scratch store path ----
    N, Cin, Cout, L, K, dil = 1, 12, 24, 40, 3, 8
    p2 = make_params(jax.random.fold_in(key, 3), Cin, Cout, K)
    x2 = jax.random.normal(jax.random.fold_in(key, 4), (N, Cin, L), jnp.float32)
    y_ref2 = temporal_block_ref(x2, p2, kernel_size=K, dilation=dil)
    y2 = jax.block_until_ready(
        temporal_block_pallas(x2, p2, kernel_size=K, dilation=dil,
                              compute_dtype=jnp.float32))
    assert y2.shape == (N, Cout, L)
    assert jnp.allclose(y2, y_ref2, rtol=1e-4, atol=1e-4), \
        f"cfg2 f32 max err {jnp.max(jnp.abs(y2 - y_ref2))}"

    print("KERNEL_OK")
</pallas_src>

<mosaic_0001>
module attributes {stable_mosaic.version = 11 : i64} {
  func.func @_temporal_block_kernel(%arg0: i32, %arg1: i32, %arg2: memref<1x1x32x16xf32, #tpu.memory_space<vmem>>, %arg3: memref<3x16x128xf32, #tpu.memory_space<vmem>>, %arg4: memref<3x128x128xf32, #tpu.memory_space<vmem>>, %arg5: memref<16x128xf32, #tpu.memory_space<vmem>>, %arg6: memref<8x128xf32, #tpu.memory_space<vmem>>, %arg7: memref<1x16x128xf32, #tpu.memory_space<vmem>>, %arg8: memref<24x128xf32, #tpu.memory_space<vmem>>) attributes {dimension_semantics = [#tpu.dimension_semantics<parallel>, #tpu.dimension_semantics<parallel>], iteration_bounds = array<i64: 2, 1>, scalar_prefetch = 0 : i64, scratch_operands = 1 : i64, tpu.core_type = #tpu.core_type<tc>, window_params = [{transform_indices = @transform_0, window_bounds = array<i64: 1, 1, 32, 16>}, {pipeline_mode = #tpu.pipeline_mode<synchronous>, transform_indices = @transform_1, window_bounds = array<i64: 3, 16, 128>}, {pipeline_mode = #tpu.pipeline_mode<synchronous>, transform_indices = @transform_2, window_bounds = array<i64: 3, 128, 128>}, {pipeline_mode = #tpu.pipeline_mode<synchronous>, transform_indices = @transform_3, window_bounds = array<i64: 16, 128>}, {pipeline_mode = #tpu.pipeline_mode<synchronous>, transform_indices = @transform_4, window_bounds = array<i64: 8, 128>}, {transform_indices = @transform_5, window_bounds = array<i64: 1, 16, 128>}]} {
    %c0 = arith.constant 0 : index
    %c0_0 = arith.constant 0 : index
    %c4 = arith.constant 4 : index
    %c0_1 = arith.constant 0 : index
    %0 = vector.load %arg2[%c0, %c0_0, %c4, %c0_1] : memref<1x1x32x16xf32, #tpu.memory_space<vmem>>, vector<1x1x24x16xf32>
    %1 = vector.shape_cast %0 : vector<1x1x24x16xf32> to vector<24x16xf32>
    %c0_2 = arith.constant 0 : index
    %c0_3 = arith.constant 0 : index
    %c0_4 = arith.constant 0 : index
    %2 = vector.load %arg3[%c0_2, %c0_3, %c0_4] : memref<3x16x128xf32, #tpu.memory_space<vmem>>, vector<1x16x128xf32>
    %3 = vector.shape_cast %2 : vector<1x16x128xf32> to vector<16x128xf32>
    %cst = arith.constant dense<0.000000e+00> : vector<24x128xf32>
    %4 = tpu.matmul %1, %3, %cst {dimension_numbers = #tpu.dot_dimension_numbers<[1], [0], [0], [1], [0, 0, 1, 1], [], []>} : vector<24x16xf32>, vector<16x128xf32>, vector<24x128xf32> -> vector<24x128xf32>
    %c0_5 = arith.constant 0 : index
    %c0_6 = arith.constant 0 : index
    %c6 = arith.constant 6 : index
    %c0_7 = arith.constant 0 : index
    %5 = vector.load %arg2[%c0_5, %c0_6, %c6, %c0_7] : memref<1x1x32x16xf32, #tpu.memory_space<vmem>>, vector<1x1x24x16xf32>
    %6 = vector.shape_cast %5 : vector<1x1x24x16xf32> to vector<24x16xf32>
    %c1 = arith.constant 1 : index
    %c0_8 = arith.constant 0 : index
    %c0_9 = arith.constant 0 : index
    %7 = vector.load %arg3[%c1, %c0_8, %c0_9] : memref<3x16x128xf32, #tpu.memory_space<vmem>>, vector<1x16x128xf32>
    %8 = vector.shape_cast %7 : vector<1x16x128xf32> to vector<16x128xf32>
    %cst_10 = arith.constant dense<0.000000e+00> : vector<24x128xf32>
    %9 = tpu.matmul %6, %8, %cst_10 {dimension_numbers = #tpu.dot_dimension_numbers<[1], [0], [0], [1], [0, 0, 1, 1], [], []>} : vector<24x16xf32>, vector<16x128xf32>, vector<24x128xf32> -> vector<24x128xf32>
    %10 = arith.addf %4, %9 : vector<24x128xf32>
    %c0_11 = arith.constant 0 : index
    %c0_12 = arith.constant 0 : index
    %c8 = arith.constant 8 : index
    %c0_13 = arith.constant 0 : index
    %11 = vector.load %arg2[%c0_11, %c0_12, %c8, %c0_13] : memref<1x1x32x16xf32, #tpu.memory_space<vmem>>, vector<1x1x24x16xf32>
    %12 = vector.shape_cast %11 : vector<1x1x24x16xf32> to vector<24x16xf32>
    %c2 = arith.constant 2 : index
    %c0_14 = arith.constant 0 : index
    %c0_15 = arith.constant 0 : index
    %13 = vector.load %arg3[%c2, %c0_14, %c0_15] : memref<3x16x128xf32, #tpu.memory_space<vmem>>, vector<1x16x128xf32>
    %14 = vector.shape_cast %13 : vector<1x16x128xf32> to vector<16x128xf32>
    %cst_16 = arith.constant dense<0.000000e+00> : vector<24x128xf32>
    %15 = tpu.matmul %12, %14, %cst_16 {dimension_numbers = #tpu.dot_dimension_numbers<[1], [0], [0], [1], [0, 0, 1, 1], [], []>} : vector<24x16xf32>, vector<16x128xf32>, vector<24x128xf32> -> vector<24x128xf32>
    %16 = arith.addf %10, %15 : vector<24x128xf32>
    %c0_17 = arith.constant 0 : index
    %c0_18 = arith.constant 0 : index
    %17 = vector.load %arg6[%c0_17, %c0_18] : memref<8x128xf32, #tpu.memory_space<vmem>>, vector<1x128xf32>
    %18 = vector.broadcast %17 : vector<1x128xf32> to vector<24x128xf32>
    %19 = arith.mulf %16, %18 : vector<24x128xf32>
    %c1_19 = arith.constant 1 : index
    %c0_20 = arith.constant 0 : index
    %20 = vector.load %arg6[%c1_19, %c0_20] : memref<8x128xf32, #tpu.memory_space<vmem>>, vector<1x128xf32>
    %21 = vector.broadcast %20 : vector<1x128xf32> to vector<24x128xf32>
    %22 = arith.addf %19, %21 : vector<24x128xf32>
    %cst_21 = arith.constant 0.000000e+00 : f32
    %23 = vector.broadcast %cst_21 : f32 to vector<24x128xf32>
    %24 = arith.maximumf %22, %23 : vector<24x128xf32>
    %c0_22 = arith.constant 0 : index
    %c0_23 = arith.constant 0 : index
    %25 = vector.load %arg8[%c0_22, %c0_23] : memref<24x128xf32, #tpu.memory_space<vmem>>, vector<24x128xf32>
    tpu.vector_store %arg8[%c0_22, %c0_23], %24 {strides = array<i32>} : memref<24x128xf32, #tpu.memory_space<vmem>>, vector<24x128xf32>,
    %c0_i32 = arith.constant 0 : i32
    %26 = arith.cmpi eq, %arg1, %c0_i32 : i32
    %27 = arith.extui %26 : i1 to i32
    %c0_i32_24 = arith.constant 0 : i32
    %28 = arith.cmpi ne, %27, %c0_i32_24 : i32
    scf.if %28 {
      %cst_57 = arith.constant 0.000000e+00 : f32
      %64 = vector.broadcast %cst_57 : f32 to vector<8x128xf32>
      %c0_58 = arith.constant 0 : index
      %c0_59 = arith.constant 0 : index
      %65 = vector.load %arg8[%c0_58, %c0_59] : memref<24x128xf32, #tpu.memory_space<vmem>>, vector<8x128xf32>
      tpu.vector_store %arg8[%c0_58, %c0_59], %64 {strides = array<i32>} : memref<24x128xf32, #tpu.memory_space<vmem>>, vector<8x128xf32>,
    } else {
    }
    %29 = vector.extract_strided_slice %24 {offsets = [8, 0], sizes = [16, 128], strides = [1, 1]} : vector<24x128xf32> to vector<16x128xf32>
    %c2_25 = arith.constant 2 : index
    %c0_26 = arith.constant 0 : index
    %c0_27 = arith.constant 0 : index
    %30 = vector.load %arg4[%c2_25, %c0_26, %c0_27] : memref<3x128x128xf32, #tpu.memory_space<vmem>>, vector<1x128x128xf32>
    %31 = vector.shape_cast %30 : vector<1x128x128xf32> to vector<128x128xf32>
    %cst_28 = arith.constant dense<0.000000e+00> : vector<16x128xf32>
    %32 = tpu.matmul %29, %31, %cst_28 {dimension_numbers = #tpu.dot_dimension_numbers<[1], [0], [0], [1], [0, 0, 1, 1], [], []>} : vector<16x128xf32>, vector<128x128xf32>, vector<16x128xf32> -> vector<16x128xf32>
    %c4_29 = arith.constant 4 : index
    %c0_30 = arith.constant 0 : index
    %33 = vector.load %arg8[%c4_29, %c0_30] : memref<24x128xf32, #tpu.memory_space<vmem>>, vector<16x128xf32>
    %c0_31 = arith.constant 0 : index
    %c0_32 = arith.constant 0 : index
    %c0_33 = arith.constant 0 : index
    %34 = vector.load %arg4[%c0_31, %c0_32, %c0_33] : memref<3x128x128xf32, #tpu.memory_space<vmem>>, vector<1x128x128xf32>
    %35 = vector.shape_cast %34 : vector<1x128x128xf32> to vector<128x128xf32>
    %cst_34 = arith.constant dense<0.000000e+00> : vector<16x128xf32>
    %36 = tpu.matmul %33, %35, %cst_34 {dimension_numbers = #tpu.dot_dimension_numbers<[1], [0], [0], [1], [0, 0, 1, 1], [], []>} : vector<16x128xf32>, vector<128x128xf32>, vector<16x128xf32> -> vector<16x128xf32>
    %37 = arith.addf %32, %36 : vector<16x128xf32>
    %c6_35 = arith.constant 6 : index
    %c0_36 = arith.constant 0 : index
    %38 = vector.load %arg8[%c6_35, %c0_36] : memref<24x128xf32, #tpu.memory_space<vmem>>, vector<16x128xf32>
    %c1_37 = arith.constant 1 : index
    %c0_38 = arith.constant 0 : index
    %c0_39 = arith.constant 0 : index
    %39 = vector.load %arg4[%c1_37, %c0_38, %c0_39] : memref<3x128x128xf32, #tpu.memory_space<vmem>>, vector<1x128x128xf32>
    %40 = vector.shape_cast %39 : vector<1x128x128xf32> to vector<128x128xf32>
    %cst_40 = arith.constant dense<0.000000e+00> : vector<16x128xf32>
    %41 = tpu.matmul %38, %40, %cst_40 {dimension_numbers = #tpu.dot_dimension_numbers<[1], [0], [0], [1], [0, 0, 1, 1], [], []>} : vector<16x128xf32>, vector<128x128xf32>, vector<16x128xf32> -> vector<16x128xf32>
    %42 = arith.addf %37, %41 : vector<16x128xf32>
    %c2_41 = arith.constant 2 : index
    %c0_42 = arith.constant 0 : index
    %43 = vector.load %arg6[%c2_41, %c0_42] : memref<8x128xf32, #tpu.memory_space<vmem>>, vector<1x128xf32>
    %44 = vector.broadcast %43 : vector<1x128xf32> to vector<16x128xf32>
    %45 = arith.mulf %42, %44 : vector<16x128xf32>
    %c3 = arith.constant 3 : index
    %c0_43 = arith.constant 0 : index
    %46 = vector.load %arg6[%c3, %c0_43] : memref<8x128xf32, #tpu.memory_space<vmem>>, vector<1x128xf32>
    %47 = vector.broadcast %46 : vector<1x128xf32> to vector<16x128xf32>
    %48 = arith.addf %45, %47 : vector<16x128xf32>
    %cst_44 = arith.constant 0.000000e+00 : f32
    %49 = vector.broadcast %cst_44 : f32 to vector<16x128xf32>
    %50 = arith.maximumf %48, %49 : vector<16x128xf32>
    %c0_45 = arith.constant 0 : index
    %c0_46 = arith.constant 0 : index
    %c16 = arith.constant 16 : index
    %c0_47 = arith.constant 0 : index
    %51 = vector.load %arg2[%c0_45, %c0_46, %c16, %c0_47] : memref<1x1x32x16xf32, #tpu.memory_space<vmem>>, vector<1x1x16x16xf32>
    %52 = vector.shape_cast %51 : vector<1x1x16x16xf32> to vector<16x16xf32>
    %c0_48 = arith.constant 0 : index
    %c0_49 = arith.constant 0 : index
    %53 = vector.load %arg5[%c0_48, %c0_49] : memref<16x128xf32, #tpu.memory_space<vmem>>, vector<16x128xf32>
    %cst_50 = arith.constant dense<0.000000e+00> : vector<16x128xf32>
    %54 = tpu.matmul %52, %53, %cst_50 {dimension_numbers = #tpu.dot_dimension_numbers<[1], [0], [0], [1], [0, 0, 1, 1], [], []>} : vector<16x16xf32>, vector<16x128xf32>, vector<16x128xf32> -> vector<16x128xf32>
    %c4_51 = arith.constant 4 : index
    %c0_52 = arith.constant 0 : index
    %55 = vector.load %arg6[%c4_51, %c0_52] : memref<8x128xf32, #tpu.memory_space<vmem>>, vector<1x128xf32>
    %56 = vector.broadcast %55 : vector<1x128xf32> to vector<16x128xf32>
    %57 = arith.addf %54, %56 : vector<16x128xf32>
    %58 = arith.addf %50, %57 : vector<16x128xf32>
    %cst_53 = arith.constant 0.000000e+00 : f32
    %59 = vector.broadcast %cst_53 : f32 to vector<16x128xf32>
    %60 = arith.maximumf %58, %59 : vector<16x128xf32>
    %c0_54 = arith.constant 0 : index
    %c0_55 = arith.constant 0 : index
    %c0_56 = arith.constant 0 : index
    %61 = vector.load %arg7[%c0_54, %c0_55, %c0_56] : memref<1x16x128xf32, #tpu.memory_space<vmem>>, vector<1x16x128xf32>
    %62 = vector.shape_cast %61 : vector<1x16x128xf32> to vector<16x128xf32>
    %63 = vector.shape_cast %60 : vector<16x128xf32> to vector<1x16x128xf32>
    tpu.vector_store %arg7[%c0_54, %c0_55, %c0_56], %63 {strides = array<i32>} : memref<1x16x128xf32, #tpu.memory_space<vmem>>, vector<1x16x128xf32>,
    return
  }
  func.func @transform_0(%arg0: i32, %arg1: i32) -> (i32, i32, i32, i32) {
    %c0_i32 = arith.constant 0 : i32
    %c0_i32_0 = arith.constant 0 : i32
    %c0_i32_1 = arith.constant 0 : i32
    return %arg0, %arg1, %c0_i32, %c0_i32_0 : i32, i32, i32, i32
  }
  func.func @transform_1(%arg0: i32, %arg1: i32) -> (i32, i32, i32) {
    %c0_i32 = arith.constant 0 : i32
    %c0_i32_0 = arith.constant 0 : i32
    %c0_i32_1 = arith.constant 0 : i32
    %c0_i32_2 = arith.constant 0 : i32
    return %c0_i32, %c0_i32_0, %c0_i32_1 : i32, i32, i32
  }
  func.func @transform_2(%arg0: i32, %arg1: i32) -> (i32, i32, i32) {
    %c0_i32 = arith.constant 0 : i32
    %c0_i32_0 = arith.constant 0 : i32
    %c0_i32_1 = arith.constant 0 : i32
    %c0_i32_2 = arith.constant 0 : i32
    return %c0_i32, %c0_i32_0, %c0_i32_1 : i32, i32, i32
  }
  func.func @transform_3(%arg0: i32, %arg1: i32) -> (i32, i32) {
    %c0_i32 = arith.constant 0 : i32
    %c0_i32_0 = arith.constant 0 : i32
    %c0_i32_1 = arith.constant 0 : i32
    return %c0_i32, %c0_i32_0 : i32, i32
  }
  func.func @transform_4(%arg0: i32, %arg1: i32) -> (i32, i32) {
    %c0_i32 = arith.constant 0 : i32
    %c0_i32_0 = arith.constant 0 : i32
    %c0_i32_1 = arith.constant 0 : i32
    return %c0_i32, %c0_i32_0 : i32, i32
  }
  func.func @transform_5(%arg0: i32, %arg1: i32) -> (i32, i32, i32) {
    %c0_i32 = arith.constant 0 : i32
    %c0_i32_0 = arith.constant 0 : i32
    return %arg0, %arg1, %c0_i32 : i32, i32, i32
  }
}

</mosaic_0001>

<bundles_post_ra>
// kernel: tpu_custom_call.1
= control target key start
LH: loop header
LB: loop body
LE: loop exit
PB: predicated region body
PF: predicated region fallthrough
CT: control target
= control target key end

     0   :  { %10 = vsyncpa [#allocation4], 0  ;;  %s1777_s0 = inlined_call_operand.vmem [shape: f32[2,1,32,16], index: 0, kind: input, shape index: {}]   ;;  %s1778_s1 = inlined_call_operand.vmem [shape: f32[3,16,128], index: 1, kind: input, shape index: {}]   ;;  %s1779_s2 = inlined_call_operand.hbm [shape: f32[3,128,128], index: 2, kind: input, shape index: {}]   ;;  %s1780_s3 = inlined_call_operand.vmem [shape: f32[16,128], index: 3, kind: input, shape index: {}]   ;;  %s1781_s4 = inlined_call_operand.vmem [shape: f32[8,128], index: 4, kind: input, shape index: {}]   ;;  %s1782_s5 = inlined_call_operand.hbm [shape: f32[2,16,128], index: 5, kind: output, shape index: {}]  }
   0x1   :  { %11 = vsyncpa [#allocation5], 0 }
   0x2   :  { %13 = vsyncpa [#allocation5 + $0x1], 0  ;;  %s1564_s18 = smov 0   ;;  %s1566_s19 = smov 0  }
   0x3   :  { %s1568_s20 = smov 0   ;;  %s1570_s21 = smov 0  }
   0x4   :  { %s1572_s22 = smov 0   ;;  %s1574_s23 = smov 0  }
   0x5 LB: > { %s1085_s24 = sadd.s32 4294967295, %s1524_s23   ;;  %s1086_s25 = sadd.s32 4294967294, %s1524_s23   ;;  %s1524_s23 = sphi %s1574_s23, %s19_s23   ;;  %s1520_s22 = sphi %s1572_s22, %s1791_s22   ;;  %s1516_s21 = sphi %s1570_s21, %s1790_s21   ;;  %s1512_s20 = sphi %s1568_s20, %s1789_s20   ;;  %s1508_s19 = sphi %s1566_s19, %s1788_s19   ;;  %s1504_s18 = sphi %s1564_s18, %s1787_s18  }
   0x6   : > { %s31_s26 = sadd.s32 1, %s1520_s22  ;;  %s152_s27 = sadd.s32 1, %s1512_s20 }
   0x7   : > { %p33_p0 = scmp.ge.s32.totalorder %s31_s26, 2  ;;  %p162_p1 = scmp.ne.s32.totalorder %s1512_s20, %s1508_s19 }
   0x8   : > { %p163_p2 = scmp.eq.s32.totalorder %s1085_s24, 1  ;;  %p168_p3 = scmp.ne.s32.totalorder %s1508_s19, %s1504_s18 }
   0x9   : > { %s1793_s26 = smov (%p33_p0, %s31_s26), 0  ;;  %p169_p5 = scmp.eq.s32.totalorder %s1086_s25, 1 }
   0xa   : > { %p1604_p4 = por %p163_p2, %p162_p1  ;;  %s147_s29 = ssub.s32 %s1520_s22, %s1793_s26 }
   0xb   : > { %p1087_p6 = scmp.ge.s32.totalorder %s1524_s23, 1  ;;  %p150_p7 = scmp.eq.s32.totalorder %s147_s29, 0 }
   0xc   : > { %p1611_p8 = por %p169_p5, %p168_p3  ;;  %p176_p9 = scmp.lt.s32.totalorder %s1524_s23, 3 }
   0xd   : > { %s1617_s6 = scalar_select %p150_p7, %s1512_s20, %s152_s27  }
   0xe   : > { %p1619_p10 = pnand %p1087_p6, %p176_p9  ;;  %p1623_p11 = scmp.eq.s32.totalorder %s1085_s24, 0 }
   0xf   : > { %s1526_s9 = smov [#allocation3]  }
  0x10   : > { %p1352_p12 = pneg %p1619_p10  ;;  %s191_s10 = sshll.u32 %s1526_s9, 4  ;;  %s192_s10 = int_to_ptr.vmem [resolvable:$true] %s191_s10 }
  0x11   : > { %s1429_s11 = scalar_lea.vmem %s192_s10, 6144  ;;  %p1437_p5 = scmp.lt.s32.totalorder %s192_s10, %s192_s10 }
  0x12   : > { %p1353_p13 = pnand %p1623_p11, %p1352_p12  ;;  %p1430_p1 = scmp.ne.s32.totalorder %s192_s10, %s1429_s11 }
  0x13   : > { %p1438_p6 = scmp.lt.s32.totalorder %s1429_s11, %s1429_s11 }
  0x14   : > { %p1420_p0 = pneg %p1353_p13 }
  0x15   : > { %p1439_p7 = por %p1438_p6, %p1437_p5 }
  0x16   : > { %p1432_p2 = pnand %p1430_p1, %p1420_p0 }
  0x18   : > { %p1433_p3 = pneg %p1432_p2 }
  0x1a   : > { %p1440_p9 = pnand %p1439_p7, %p1433_p3 }
  0x1c   : > { %1443 = shalt.err (!%p1440_p9)
}
  0x1d   : > { %s1527_s12 = smov 128   ;;  %s1528_s13 = smov 8  }
  0x1e   : > { %1355 = dma.hbm_to_vmem [thread:$0]  (!%p1353_p13), %s1779_s2, 6144, %s192_s10, [#allocation4], %s1527_s12, %s1527_s12, %s1528_s13  }
  0x1f   : > { %225 = sbr.rel (%p1619_p10) target bundleno = 538 (0x21a), region = 40 }
  0x24   : > { %1495 = dma.done.wait (%p1623_p11), [#allocation4], 6144  }
  0x25   : > { %1497 = vsyncadd (%p1623_p11), [#allocation4], 4294961152  ;;  %p257_p12 = scmp.lt.s32.totalorder %s1516_s21, 1  ;;  %v1529_v0 = vmov 0.0   ;;  %vm1530_vm0 = vmmov 0   ;;  %v1096_v1 = vld [vmem:[%s1778_s1 + $0x18] sm:$0xff] }
  0x26   : > { %1195 = vmatprep.subr.mxu0 %v1529_v0  ;;  %1199 = vmatprep.mubr.msk.f32.mxu0 %vm1530_vm0, %v1529_v0  ;;  %581 = vst [vmem:[#allocation2] sm:$0xff] %v1529_v0  ;;  %v1095_v2 = vld [vmem:[%s1778_s1 + $0x10] sm:$0xff]  ;;  %vm278_vm1 = vcmask 130048   ;;  %v271_v4 = vld [vmem:[%s1778_s1 + $0x8] sm:$0xff]  ;;  %v270_v5 = vld [vmem:[%s1778_s1] sm:$0xff]  ;;  %s254_s13 = sand.u32 1, %s1508_s19  }
  0x27   : > { %s258_s16 = scalar_select %p257_p12, %s1516_s21, 1  ;;  %1196 = vmatpush3.msra.mxu0 %v1096_v1  ;;  %v1104_v9 = vld [vmem:[%s1778_s1 + $0x28] sm:$0xff]  ;;  %v1103_v10 = vld [vmem:[%s1778_s1 + $0x20] sm:$0xff]  ;;  %v598_v16 = vld [vmem:[#allocation3 + $0x178] sm:$0xff] }
  0x28   : > { %1197 = vmatprep.subr.mxu0 %v1529_v0  ;;  %v597_v17 = vld [vmem:[#allocation3 + $0x170] sm:$0xff]  ;;  %v596_v18 = vld [vmem:[#allocation3 + $0x168] sm:$0xff]  ;;  %v595_v19 = vld [vmem:[#allocation3 + $0x160] sm:$0xff]  ;;  %s1092_s24 = sshll.u32 %s254_s13, 4  ;;  %s1121_s29 = sshll.u32 %s1516_s21, 8 }
  0x29   : > { %s1120_s17 = sshll.u32 %s258_s16, 5  ;;  %1198 = vmatpush3.msra.mxu0 %v1095_v2  ;;  %v616_v20 = vld [vmem:[#allocation3 + $0x78] sm:$0xff]  ;;  %v615_v22 = vld [vmem:[#allocation3 + $0x70] sm:$0xff]  ;;  %v614_v24 = vld [vmem:[#allocation3 + $0x68] sm:$0xff]  ;;  %s256_s25 = scalar_lea.vmem [#allocation6], %s1092_s24 }
  0x2a   : > { %s1646_s27 = scalar_lea.vmem %s1777_s0, %s1120_s17  ;;  %1208 = vmatprep.subr.mxu0 %v1529_v0  ;;  %1234 = vmatprep.subr.mxu1 %v616_v20  ;;  %v594_v21 = vld [vmem:[#allocation3 + $0x158] sm:$0xff]  ;;  %v593_v23 = vld [vmem:[#allocation3 + $0x150] sm:$0xff]  ;;  %v592_v25 = vld [vmem:[#allocation3 + $0x148] sm:$0xff]  ;;  %s1730_s9 = scalar_lea.hbm %s1782_s5, %s1121_s29 }
  0x2b   : > { %v272_v3 = vld [vmem:[%s1646_s27 + $0x6] sm:$0xff]  ;;  %v273_v6 = vld [vmem:[%s1646_s27 + $0xe] sm:$0xff]  ;;  %v274_v7 = vld [vmem:[%s1646_s27 + $0x16] sm:$0xff]  ;;  %1235 = vmatpush3.msra.mxu1 %v616_v20  ;;  %s1732_s10 = scalar_lea.sflag [#allocation5], %s254_s13  ;;  %s1531_s21 = smov [#allocation6]  }
  0x2c   : > { %1200 = vmatmul.mubr.msk.f32.vlgmr.msra.gmra.mxu0 %vm278_vm1, %v272_v3  ;;  %v267_v8 = vld [vmem:[%s1646_s27 + $0x4] sm:$0xff]  ;;  %v268_v11 = vld [vmem:[%s1646_s27 + $0xc] sm:$0xff]  ;;  %v269_v12 = vld [vmem:[%s1646_s27 + $0x14] sm:$0xff]  ;;  %1236 = vmatprep.subr.mxu1 %v615_v22  ;;  %s1448_s12 = sshll.u32 %s1531_s21, 4  ;;  %s1449_s12 = int_to_ptr.vmem [resolvable:$false] %s1448_s12 }
  0x2d   : > { %1209 = vmatpush3.msra.mxu0 %v271_v4  ;;  %1202 = vmatprep.mubr.msk.f32.mxu0 %vm1530_vm0, %v1529_v0  ;;  %v457_v13 = vld [vmem:[%s1646_s27 + $0x8] sm:$0xff]  ;;  %v1688_v14 = vld [vmem:[%s1646_s27 + $0x10] sm:$0xff]  ;;  %v1694_v15 = vld [vmem:[%s1646_s27 + $0x18] sm:$0xff]  ;;  %s991_s27 = sshll.u32 %s256_s25, 4  ;;  %s1450_s14 = scalar_lea.vmem %s1449_s12, 512  ;;  %s1725_s27 = int_to_ptr.vmem [resolvable:$true] %s991_s27 }
  0x2e   : > { %1210 = vmatprep.subr.mxu0 %v1529_v0  ;;  %1237 = vmatpush3.msra.mxu1 %v615_v22  ;;  %v613_v26 = vld [vmem:[#allocation3 + $0x60] sm:$0xff]  ;;  %v612_v28 = vld [vmem:[#allocation3 + $0x58] sm:$0xff]  ;;  %v611_v30 = vld [vmem:[#allocation3 + $0x50] sm:$0xff]  ;;  %s1444_s11 = scalar_lea.vmem %s1725_s27, 256  ;;  %p1451_p0 = scmp.lt.s32.totalorder %s1725_s27, %s1449_s12 }
  0x2f   : > { %1211 = vmatpush3.msra.mxu0 %v270_v5  ;;  %1238 = vmatprep.subr.mxu1 %v614_v24  ;;  %v591_v27 = vld [vmem:[#allocation3 + $0x140] sm:$0xff]  ;;  %v590_v29 = vld [vmem:[#allocation3 + $0x138] sm:$0xff]  ;;  %v589_v31 = vld [vmem:[#allocation3 + $0x130] sm:$0xff]  ;;  %p1445_p10 = scmp.ne.s32.totalorder %s1725_s27, %s1444_s11  ;;  %p1452_p1 = scmp.lt.s32.totalorder %s1450_s14, %s1444_s11 }
  0x30   : > { %1203 = vmatmul.mubr.msk.f32.gmra.mxu0 %vm278_vm1, %v273_v6  ;;  %1221 = vmatprep.subr.mxu0 %v1529_v0  ;;  %v610_v32 = vld [vmem:[#allocation3 + $0x48] sm:$0xff]  ;;  %v609_v34 = vld [vmem:[#allocation3 + $0x40] sm:$0xff]  ;;  %v608_v36 = vld [vmem:[#allocation3 + $0x38] sm:$0xff] }
  0x31   : > { %1205 = vmatprep.mubr.msk.f32.mxu0 %vm1530_vm0, %v1529_v0  ;;  %1239 = vmatpush3.msra.mxu1 %v614_v24  ;;  %v588_v33 = vld [vmem:[#allocation3 + $0x128] sm:$0xff]  ;;  %v587_v35 = vld [vmem:[#allocation3 + $0x120] sm:$0xff]  ;;  %v586_v37 = vld [vmem:[#allocation3 + $0x118] sm:$0xff]  ;;  %p1446_p11 = pnand %p1445_p10, %p1604_p4  ;;  %p1453_p2 = por %p1452_p1, %p1451_p0 }
  0x32   : > { %1240 = vmatprep.subr.mxu1 %v613_v26  ;;  %v607_v38 = vld [vmem:[#allocation3 + $0x30] sm:$0xff]  ;;  %v606_v40 = vld [vmem:[#allocation3 + $0x28] sm:$0xff]  ;;  %v605_v42 = vld [vmem:[#allocation3 + $0x20] sm:$0xff] }
  0x33   : > { %1241 = vmatpush3.msra.mxu1 %v613_v26  ;;  %v585_v39 = vld [vmem:[#allocation3 + $0x110] sm:$0xff]  ;;  %v584_v41 = vld [vmem:[#allocation3 + $0x108] sm:$0xff]  ;;  %v583_v43 = vld [vmem:[#allocation3 + $0x100] sm:$0xff]  ;;  %p1447_p13 = pneg %p1446_p11 }
  0x34   : > { %1206 = vmatmul.mubr.msk.f32.gmra.mxu0 %vm278_vm1, %v274_v7  ;;  %1242 = vmatprep.subr.mxu1 %v612_v28  ;;  %v604_v44 = vld [vmem:[#allocation3 + $0x18] sm:$0xff]  ;;  %v603_v45 = vld [vmem:[#allocation3 + $0x10] sm:$0xff]  ;;  %v602_v46 = vld [vmem:[#allocation3 + $0x8] sm:$0xff] }
  0x35   : > { %1212 = vmatprep.mubr.msk.f32.mxu0 %vm1530_vm0, %v1529_v0  ;;  %1243 = vmatpush3.msra.mxu1 %v612_v28  ;;  %v601_v47 = vld [vmem:[#allocation3] sm:$0xff]  ;;  %v785_v48 = vld [vmem:[#allocation3 + $0xf8] sm:$0xff]  ;;  %v882_v49 = vld [vmem:[%s1780_s3 + $0x8] sm:$0xff]  ;;  %p1454_p3 = pnand %p1453_p2, %p1447_p13 }
  0x36   : > { %1244 = vmatprep.subr.mxu1 %v611_v30  ;;  %v1108_v1 = vld [vmem:[%s1781_s4] ss:$0 sm:$0xff]  ;;  %v1109_v4 = vld [vmem:[%s1781_s4 + $0x1] ss:$0 sm:$0xff]  ;;  %v782_v24 = vld [vmem:[#allocation3 + $0xe0] sm:$0xff] }
  0x37   : > { %1245 = vmatpush3.msra.mxu1 %v611_v30  ;;  %v779_v26 = vld [vmem:[#allocation3 + $0xc8] sm:$0xff]  ;;  %v776_v28 = vld [vmem:[#allocation3 + $0xb0] sm:$0xff]  ;;  %v774_v30 = vld [vmem:[#allocation3 + $0xa0] sm:$0xff] }
  0x38   : > { %1213 = vmatmul.mubr.msk.f32.vlgmr.msra.gmra.mxu0 %vm278_vm1, %v267_v8  ;;  %1246 = vmatprep.subr.mxu1 %v610_v32 }
  0x39   : > { %1222 = vmatpush3.msra.mxu0 %v1104_v9  ;;  %1215 = vmatprep.mubr.msk.f32.mxu0 %vm1530_vm0, %v1529_v0 }
  0x3a   : > { %1223 = vmatprep.subr.mxu0 %v1529_v0  ;;  %1247 = vmatpush3.msra.mxu1 %v610_v32  ;;  %v772_v32 = vld [vmem:[#allocation3 + $0x90] sm:$0xff] }
  0x3b   : > { %1224 = vmatpush3.msra.mxu0 %v1103_v10  ;;  %1248 = vmatprep.subr.mxu1 %v609_v34 }
  0x3c   : > { %1216 = vmatmul.mubr.msk.f32.gmra.mxu0 %vm278_vm1, %v268_v11  ;;  %1269 = vmatprep.subr.mxu0 %v598_v16 }
  0x3d   : > { %1218 = vmatprep.mubr.msk.f32.mxu0 %vm1530_vm0, %v1529_v0  ;;  %1249 = vmatpush3.msra.mxu1 %v609_v34  ;;  %v770_v34 = vld [vmem:[#allocation3 + $0x80] sm:$0xff] }
  0x3e   : > { %1250 = vmatprep.subr.mxu1 %v608_v36 }
  0x3f   : > { %1251 = vmatpush3.msra.mxu1 %v608_v36 }
  0x40   : > { %1219 = vmatmul.mubr.msk.f32.gmra.mxu0 %vm278_vm1, %v269_v12  ;;  %1252 = vmatprep.subr.mxu1 %v607_v38 }
  0x41   : > { %1225 = vmatprep.mubr.msk.f32.mxu0 %vm1530_vm0, %v1529_v0  ;;  %1253 = vmatpush3.msra.mxu1 %v607_v38 }
  0x42   : > { %1254 = vmatprep.subr.mxu1 %v606_v40 }
  0x43   : > { %1255 = vmatpush3.msra.mxu1 %v606_v40 }
  0x44   : > { %1226 = vmatmul.mubr.msk.f32.vlgmr.msra.gmra.mxu0 %vm278_vm1, %v457_v13  ;;  %1256 = vmatprep.subr.mxu1 %v605_v42 }
  0x45   : > { %1228 = vmatprep.mubr.msk.f32.mxu0 %vm1530_vm0, %v1529_v0  ;;  %1270 = vmatpush3.msra.mxu0 %v598_v16 }
  0x46   : > { %1271 = vmatprep.subr.mxu0 %v597_v17  ;;  %1257 = vmatpush3.msra.mxu1 %v605_v42  ;;  %v1110_v42 = vld [vmem:[%s1781_s4 + $0x2] ss:$0 sm:$0xff] }
  0x47   : > { %1272 = vmatpush3.msra.mxu0 %v597_v17  ;;  %1258 = vmatprep.subr.mxu1 %v604_v44 }
  0x48   : > { %1229 = vmatmul.mubr.msk.f32.gmra.mxu0 %vm278_vm1, %v1688_v14  ;;  %1273 = vmatprep.subr.mxu0 %v596_v18 }
  0x49   : > { %1231 = vmatprep.mubr.msk.f32.mxu0 %vm1530_vm0, %v1529_v0  ;;  %1274 = vmatpush3.msra.mxu0 %v596_v18  ;;  %v881_v18 = vld [vmem:[%s1780_s3] sm:$0xff] }
  0x4a   : > { %1275 = vmatprep.subr.mxu0 %v595_v19  ;;  %1259 = vmatpush3.msra.mxu1 %v604_v44 }
  0x4b   : > { %1276 = vmatpush3.msra.mxu0 %v595_v19  ;;  %1260 = vmatprep.subr.mxu1 %v603_v45 }
  0x4c   : > { %1232 = vmatmul.mubr.msk.f32.gmra.mxu0 %vm278_vm1, %v1694_v15  ;;  %1277 = vmatprep.subr.mxu0 %v594_v21 }
  0x4d   : > { %1278 = vmatpush3.msra.mxu0 %v594_v21  ;;  %1261 = vmatpush3.msra.mxu1 %v603_v45  ;;  %v784_v21 = vld [vmem:[#allocation3 + $0xf0] sm:$0xff]  ;;  %v1111_v45 = vld [vmem:[%s1781_s4 + $0x3] ss:$0 sm:$0xff] }
  0x4e   : > { %1279 = vmatprep.subr.mxu0 %v593_v23  ;;  %1262 = vmatprep.subr.mxu1 %v602_v46 }
  0x4f   : > { %1280 = vmatpush3.msra.mxu0 %v593_v23  ;;  %1263 = vmatpush3.msra.mxu1 %v602_v46  ;;  %v783_v23 = vld [vmem:[#allocation3 + $0xe8] sm:$0xff] }
  0x50   : > { %1281 = vmatprep.subr.mxu0 %v592_v25  ;;  %1264 = vmatprep.subr.mxu1 %v601_v47 }
  0x51   : > { %1282 = vmatpush3.msra.mxu0 %v592_v25  ;;  %1265 = vmatpush3.msra.mxu1 %v601_v47  ;;  %v780_v25 = vld [vmem:[#allocation3 + $0xd0] sm:$0xff] }
  0x52   : > { %1283 = vmatprep.subr.mxu0 %v591_v27  ;;  %1304 = vmatprep.subr.mxu1 %v785_v48 }
  0x53   : > { %1284 = vmatpush3.msra.mxu0 %v591_v27  ;;  %v777_v27 = vld [vmem:[#allocation3 + $0xb8] sm:$0xff] }
  0x54   : > { %1285 = vmatprep.subr.mxu0 %v590_v29 }
  0x55   : > { %1286 = vmatpush3.msra.mxu0 %v590_v29  ;;  %v775_v29 = vld [vmem:[#allocation3 + $0xa8] sm:$0xff] }
  0x56   : > { %1287 = vmatprep.subr.mxu0 %v589_v31 }
  0x57   : > { %1288 = vmatpush3.msra.mxu0 %v589_v31  ;;  %v773_v31 = vld [vmem:[#allocation3 + $0x98] sm:$0xff] }
  0x58   : > { %1289 = vmatprep.subr.mxu0 %v588_v33 }
  0x59   : > { %1290 = vmatpush3.msra.mxu0 %v588_v33  ;;  %v771_v33 = vld [vmem:[#allocation3 + $0x88] sm:$0xff] }
  0x5a   : > { %1291 = vmatprep.subr.mxu0 %v587_v35 }
  0x5b   : > { %1292 = vmatpush3.msra.mxu0 %v587_v35 }
  0x5c   : > { %1293 = vmatprep.subr.mxu0 %v586_v37 }
  0x5d   : > { %1294 = vmatpush3.msra.mxu0 %v586_v37 }
  0x5e   : > { %1295 = vmatprep.subr.mxu0 %v585_v39 }
  0x5f   : > { %1296 = vmatpush3.msra.mxu0 %v585_v39 }
  0x60   : > { %1297 = vmatprep.subr.mxu0 %v584_v41 }
  0x61   : > { %1298 = vmatpush3.msra.mxu0 %v584_v41 }
  0x62   : > { %1299 = vmatprep.subr.mxu0 %v583_v43 }
  0x63   : > { %1300 = vmatpush3.msra.mxu0 %v583_v43 }
  0x64   : > { %1339 = vmatprep.subr.mxu0 %v882_v49 }
  0xec   : > { %v354_v50 = vpop.f32.mrf.mxu0 }
  0xee   : > { %v1201_v51 = vpop.f32.mrf.mxu0 }
  0xf0   : > { %v359_v52 = vpop.f32.mrf.mxu0 }
  0xf2   : > { %v1204_v53 = vpop.f32.mrf.mxu0 }
  0xf4   : > { %v364_v54 = vpop.f32.mrf.mxu0 }
  0xf6   : > { %v1207_v55 = vpop.f32.mrf.mxu0 }
  0xf8   : > { %v443_v56 = vpop.f32.mrf.mxu0 }
  0xfa   : > { %v1214_v57 = vpop.f32.mrf.mxu0 }
  0xfc   : > { %v448_v58 = vpop.f32.mrf.mxu0 }
  0xfd   : > { %v449_v0 = vadd.f32 %v448_v58, %v359_v52 }
  0xfe   : > { %v1217_v59 = vpop.f32.mrf.mxu0 }
 0x100   : > { %v453_v60 = vpop.f32.mrf.mxu0 }
 0x101   : > { %v454_v6 = vadd.f32 %v453_v60, %v364_v54 }
 0x102   : > { %v1220_v61 = vpop.f32.mrf.mxu0 }
 0x104   : > { %v538_v62 = vpop.f32.mrf.mxu0 }
 0x106   : > { %v1227_v63 = vpop.f32.mrf.mxu0 }
 0x108   : > { %v543_v2 = vpop.f32.mrf.mxu0 }
 0x109   : > { %v553_v3 = vadd.f32 %v543_v2, %v449_v0 }
 0x10a   : > { %v1230_v5 = vpop.f32.mrf.mxu0 }
 0x10b   : > { %v561_v7 = vmul.f32 %v1108_v1, %v553_v3 }
 0x10c   : > { %v548_v8 = vpop.f32.mrf.mxu0 }
 0x10d   : > { %v554_v9 = vadd.f32 %v548_v8, %v454_v6  ;;  %v569_v10 = vadd.f32 %v1109_v4, %v561_v7 }
 0x10e   : > { %v1233_v11 = vpop.f32.mrf.mxu0 }
 0x10f   : > { %v562_v12 = vmul.f32 %v1108_v1, %v554_v9  ;;  %v572_v13 = vmax.f32 %v569_v10, 0.0 }
 0x111   : > { %v570_v16 = vadd.f32 %v1109_v4, %v562_v12  ;;  %575 = vst [vmem:[#allocation2 + $0x8] sm:$0xff] %v572_v13  ;;  %1301 = vmatprep.mubr.f32.mxu0 %v572_v13 }
 0x113   : > { %v573_v17 = vmax.f32 %v570_v16, 0.0 }
 0x115   : > { %576 = vst [vmem:[#allocation2 + $0x10] sm:$0xff] %v573_v17  ;;  %1302 = vmatmul.mubr.f32.vlgmr.msra.gmra.mxu0 %v573_v17 }
 0x116   : > { %1340 = vmatpush3.msra.mxu0 %v882_v49  ;;  %1343 = vmatprep.mubr.msk.f32.mxu0 %vm278_vm1, %v1688_v14  ;;  %v781_v14 = vld [vmem:[#allocation3 + $0xd8] sm:$0xff] }
 0x117   : > { %1341 = vmatprep.subr.mxu0 %v881_v18 }
 0x118   : > { %v599_v19 = vld [vmem:[#allocation2 + $0x4] sm:$0xff]  ;;  %1342 = vmatpush3.msra.mxu0 %v881_v18 }
 0x119   : > { %1266 = vmatprep.mubr.f32.mxu1 %v599_v19  ;;  %1344 = vmatmul.mubr.msk.f32.vlgmr.msra.gmra.mxu0 %vm278_vm1, %v1694_v15  ;;  %v767_v22 = vld [vmem:[#allocation2 + $0x6] sm:$0xff]  ;;  %v778_v15 = vld [vmem:[#allocation3 + $0xc0] sm:$0xff] }
 0x11c   : > { %v600_v20 = vld [vmem:[#allocation2 + $0xc] sm:$0xff] }
 0x11d   : > { %1267 = vmatmul.mubr.f32.vlgmr.msra.gmra.mxu1 %v600_v20  ;;  %v768_v35 = vld [vmem:[#allocation2 + $0xe] sm:$0xff] }
 0x11e   : > { %1305 = vmatpush3.msra.mxu1 %v785_v48  ;;  %1336 = vmatprep.mubr.f32.mxu1 %v767_v22  ;;  %v1112_v48 = vld [vmem:[%s1781_s4 + $0x4] ss:$0 sm:$0xff] }
 0x11f   : > { %1306 = vmatprep.subr.mxu1 %v784_v21 }
 0x120   : > { %1307 = vmatpush3.msra.mxu1 %v784_v21 }
 0x121   : > { %1308 = vmatprep.subr.mxu1 %v783_v23 }
 0x122   : > { %1309 = vmatpush3.msra.mxu1 %v783_v23 }
 0x123   : > { %1310 = vmatprep.subr.mxu1 %v782_v24 }
 0x124   : > { %1311 = vmatpush3.msra.mxu1 %v782_v24 }
 0x125   : > { %1312 = vmatprep.subr.mxu1 %v781_v14 }
 0x126   : > { %1313 = vmatpush3.msra.mxu1 %v781_v14 }
 0x127   : > { %1314 = vmatprep.subr.mxu1 %v780_v25 }
 0x128   : > { %1315 = vmatpush3.msra.mxu1 %v780_v25 }
 0x129   : > { %1316 = vmatprep.subr.mxu1 %v779_v26 }
 0x12a   : > { %1317 = vmatpush3.msra.mxu1 %v779_v26 }
 0x12b   : > { %1318 = vmatprep.subr.mxu1 %v778_v15 }
 0x12c   : > { %1319 = vmatpush3.msra.mxu1 %v778_v15 }
 0x12d   : > { %1320 = vmatprep.subr.mxu1 %v777_v27 }
 0x12e   : > { %1321 = vmatpush3.msra.mxu1 %v777_v27 }
 0x12f   : > { %1322 = vmatprep.subr.mxu1 %v776_v28 }
 0x130   : > { %1323 = vmatpush3.msra.mxu1 %v776_v28 }
 0x131   : > { %1324 = vmatprep.subr.mxu1 %v775_v29 }
 0x132   : > { %1325 = vmatpush3.msra.mxu1 %v775_v29 }
 0x133   : > { %1326 = vmatprep.subr.mxu1 %v774_v30 }
 0x134   : > { %1327 = vmatpush3.msra.mxu1 %v774_v30 }
 0x135   : > { %1328 = vmatprep.subr.mxu1 %v773_v31 }
 0x136   : > { %1329 = vmatpush3.msra.mxu1 %v773_v31 }
 0x137   : > { %1330 = vmatprep.subr.mxu1 %v772_v32 }
 0x138   : > { %1331 = vmatpush3.msra.mxu1 %v772_v32 }
 0x139   : > { %1332 = vmatprep.subr.mxu1 %v771_v33 }
 0x13a   : > { %1333 = vmatpush3.msra.mxu1 %v771_v33 }
 0x13b   : > { %1334 = vmatprep.subr.mxu1 %v770_v34 }
 0x13c   : > { %1335 = vmatpush3.msra.mxu1 %v770_v34 }
 0x13d   : > { %1337 = vmatmul.mubr.f32.vlgmr.msra.gmra.mxu1 %v768_v35 }
 0x1d5   : > { %v1303_v37 = vpop.f32.mrf.mxu0 }
 0x1d7   : > { %v758_v40 = vpop.f32.mrf.mxu0 }
 0x1d9   : > { %v1345_v47 = vpop.f32.mrf.mxu0 }
 0x1da   : > { %v966_v53 = vadd.f32 %v1345_v47, %v1112_v48 }
 0x1db   : > { %v960_v54 = vpop.f32.mrf.mxu0 }
 0x1dc   : > { %v961_v59 = vadd.f32 %v1112_v48, %v960_v54 }
 0x1dd   : > { %v1268_v36 = vpop.f32.mrf.mxu1 }
 0x1de   : > { %v764_v39 = vadd.f32 %v1303_v37, %v1268_v36 }
 0x1df   : > { %v683_v38 = vpop.f32.mrf.mxu1 }
 0x1e0   : > { %v759_v43 = vadd.f32 %v758_v40, %v683_v38 }
 0x1fd   : > { %v1338_v41 = vpop.f32.mrf.mxu1 }
 0x1fe   : > { %v862_v44 = vadd.f32 %v1338_v41, %v764_v39 }
 0x1ff   : > { %v852_v46 = vpop.f32.mrf.mxu1 }
 0x200   : > { %v869_v49 = vmul.f32 %v1110_v42, %v862_v44  ;;  %v861_v50 = vadd.f32 %v852_v46, %v759_v43 }
 0x202   : > { %v876_v51 = vadd.f32 %v1111_v45, %v869_v49  ;;  %v868_v52 = vmul.f32 %v1110_v42, %v861_v50 }
 0x204   : > { %v875_v55 = vadd.f32 %v1111_v45, %v868_v52  ;;  %v878_v56 = vmax.f32 %v876_v51, 0.0 }
 0x206   : > { %v970_v57 = vadd.f32 %v966_v53, %v878_v56  ;;  %v877_v58 = vmax.f32 %v875_v55, 0.0 }
 0x208   : > { %v972_v60 = vmax.f32 %v970_v57, 0.0  ;;  %v969_v61 = vadd.f32 %v961_v59, %v877_v58 }
 0x20a   : > { %974 = vst [vmem:[%s256_s25 + $0x8] sm:$0xff] %v972_v60  ;;  %v971_v62 = vmax.f32 %v969_v61, 0.0 }
 0x20c   : > { %973 = vst [vmem:[%s256_s25] sm:$0xff] %v971_v62 }
 0x20d   : > { %1457 = shalt.err (!%p1454_p3)
}
 0x20e   : > { %s1458_s13 = scalar_lea.hbm %s1730_s9, 256  ;;  %s1462_s17 = scalar_lea.hbm %s1782_s5, 512 }
 0x20f   : > { %p1459_p5 = scmp.ne.s32.totalorder %s1730_s9, %s1458_s13  ;;  %p1463_p9 = scmp.lt.s32.totalorder %s1730_s9, %s1782_s5 }
 0x210   : > { %p1464_p12 = scmp.lt.s32.totalorder %s1462_s17, %s1458_s13 }
 0x211   : > { %p1460_p6 = pnand %p1459_p5, %p1604_p4 }
 0x212   : > { %p1465_p10 = por %p1464_p12, %p1463_p9 }
 0x213   : > { %p1461_p7 = pneg %p1460_p6 }
 0x215   : > { %p1466_p11 = pnand %p1465_p10, %p1461_p7 }
 0x217   : > { %1469 = shalt.err (!%p1466_p11)
}
 0x218   : > { %s1532_s29 = smov 128   ;;  %s1533_s7 = smov 8  }
 0x219   : > { %1350 = dma.vmem_to_hbm [thread:$0]  (%p1604_p4), %s1725_s27, 256, %s1730_s9, %s1732_s10, %s1532_s29, %s1532_s29, %s1533_s7  }
 0x21a PF: > { %p1362_p13 = scmp.ge.s32.totalorder %s1524_s23, 2  ;;  %s1006_s8 = sand.u32 1, %s1504_s18  }
 0x21b   : > { %s1007_s11 = scalar_lea.sflag [#allocation5], %s1006_s8 }
 0x21c   : > { %p1357_p0 = pnand %p1362_p13, %p1611_p8 }
 0x21e   : > { %p1358_p1 = pneg %p1357_p0 }
 0x220   : > { %1499 = dma.done.wait (%p1358_p1), %s1007_s11, 256  }
 0x221   : > { %1501 = vsyncadd (%p1358_p1), %s1007_s11, 4294967040  ;;  %s19_s23 = sadd.s32 1, %s1524_s23   ;;  %s1787_s18 = smov %s1508_s19 }
 0x222   : > { %p16_p2 = scmp.ge.s32.totalorder %s19_s23, 4   ;;  %s1788_s19 = smov %s1512_s20 }
 0x223   : > { %s1789_s20 = smov %s1617_s6  ;;  %s1790_s21 = smov %s1520_s22 }
 0x224   : > { %s1791_s22 = smov %s1793_s26  ;;  %18 = sbr.rel (!%p16_p2) target bundleno = 5 (0x5), region = 88 }
 0x229   :  { %1012 = vsyncpa [#allocation4], 1 }
 0x22a   :  { %1014 = vsyncpa [#allocation4 + $0x1], 1 }
 0x22b   :  { %1015 = vsyncpa [#allocation5], 1 }
 0x22c   :  { %1017 = vsyncpa [#allocation5 + $0x1], 1 }

</bundles_post_ra>
